<compile_context>
chip_gen: v7x
topology: tpu7x:2x2x1
jax: 0.10.0
libtpu: 0.0.40
codegen_flags: <defaults>
</compile_context>

<pallas_src>
import math

import jax
import jax.numpy as jnp
from jax import lax
from jax.experimental import pallas as pl
from jax.experimental.pallas import tpu as pltpu


# ----------------------------------------------------------------------------
# Kernel 1: hoisted input projection  gates_x = x @ W_ih^T + bias
#   x2d : (T*B, E)  bf16     w : (E, 4H) bf16     b : (1, 4H) f32
#   out : (T*B, 4H) f32
# ----------------------------------------------------------------------------
def _input_proj_kernel(x_ref, w_ref, b_ref, o_ref):
    o_ref[...] = (
        jnp.dot(x_ref[...], w_ref[...], preferred_element_type=jnp.float32)
        + b_ref[...])


# ----------------------------------------------------------------------------
# Kernel 2: LSTM recurrence over one chunk of TT timesteps.
#   Gate order follows PyTorch: i, f, g, o.
# ----------------------------------------------------------------------------
def _lstm_rec_kernel(lengths_ref,   # (B, 1)      int32
                     gx_ref,        # (TT, B, 4H) f32  precomputed x-gates
                     whh_ref,       # (H, 4H)     bf16
                     h0_ref,        # (B, H)      f32
                     c0_ref,        # (B, H)      f32
                     y_ref,         # (TT, B, H)  f32  outputs for this chunk
                     hn_ref,        # (B, H)      f32  resident hidden state
                     cn_ref):       # (B, H)      f32  resident cell state
    TT = gx_ref.shape[0]
    H = hn_ref.shape[-1]
    chunk = pl.program_id(0)

    @pl.when(chunk == 0)
    def _():
        hn_ref[...] = h0_ref[...]
        cn_ref[...] = c0_ref[...]

    lengths = lengths_ref[...]                       # (B, 1) int32
    w_hh = whh_ref[...]                              # (H, 4H) bf16
    t_base = chunk * TT

    # sigmoid(x) = 0.5*(tanh(0.5*x)+1): pre-scale the i/f/o gate columns by 0.5
    # so ONE tanh over the full (B, 4H) slab handles all four gates.
    col = lax.broadcasted_iota(jnp.int32, (1, 4 * H), 1)
    g_cols = (col >= 2 * H) & (col < 3 * H)
    pre_scale = jnp.where(g_cols, 1.0, 0.5)          # (1, 4H) f32

    def step(i, carry):
        h, c = carry                                 # (B, H) f32
        gates = gx_ref[i] + jnp.dot(h.astype(jnp.bfloat16), w_hh,
                                    preferred_element_type=jnp.float32)
        act = jnp.tanh(gates * pre_scale)            # single EUP chain, 4 gates
        i_g = act[:, 0 * H:1 * H] * 0.5 + 0.5
        f_g = act[:, 1 * H:2 * H] * 0.5 + 0.5
        g_g = act[:, 2 * H:3 * H]
        o_g = act[:, 3 * H:4 * H] * 0.5 + 0.5
        c_new = f_g * c + i_g * g_g
        h_new = o_g * jnp.tanh(c_new)
        valid = (t_base + i) < lengths               # (B, 1) bool
        y_ref[i] = jnp.where(valid, h_new, 0.0)      # packed-seq: zero past len
        return jnp.where(valid, h_new, h), jnp.where(valid, c_new, c)

    h, c = lax.fori_loop(0, TT, step, (hn_ref[...], cn_ref[...]), unroll=True)
    hn_ref[...] = h
    cn_ref[...] = c


# ----------------------------------------------------------------------------
# One LSTM layer over a (T, B, E) time-major sequence with per-sequence lengths
# ----------------------------------------------------------------------------
def lstm_layer(x_tbe, lengths_b, w_ih, w_hh, b_ih, b_hh, h0, c0, *, time_chunk):
    T, B, E = x_tbe.shape
    H = h0.shape[-1]
    assert T % time_chunk == 0
    n_chunks = T // time_chunk

    # ---- hoisted input projection: one big throughput-bound matmul ----------
    w_ih_t = jnp.transpose(w_ih).astype(jnp.bfloat16)              # (E, 4H)
    bias = (b_ih + b_hh).reshape(1, 4 * H).astype(jnp.float32)
    x2d = x_tbe.reshape(T * B, E).astype(jnp.bfloat16)
    rows_per_block = time_chunk * B
    gates_x = pl.pallas_call(
        _input_proj_kernel,
        grid=(n_chunks,),
        in_specs=[
            pl.BlockSpec((rows_per_block, E), lambda r: (r, 0)),
            pl.BlockSpec((E, 4 * H), lambda r: (0, 0)),
            pl.BlockSpec((1, 4 * H), lambda r: (0, 0)),
        ],
        out_specs=pl.BlockSpec((rows_per_block, 4 * H), lambda r: (r, 0)),
        out_shape=jax.ShapeDtypeStruct((T * B, 4 * H), jnp.float32),
        compiler_params=pltpu.CompilerParams(
            dimension_semantics=("parallel",)),
    )(x2d, w_ih_t, bias).reshape(T, B, 4 * H)

    # ---- serial recurrence: only h @ W_hh on the critical path --------------
    w_hh_t = jnp.transpose(w_hh).astype(jnp.bfloat16)              # (H, 4H)
    lengths2 = lengths_b.reshape(B, 1).astype(jnp.int32)
    y, hn, cn = pl.pallas_call(
        _lstm_rec_kernel,
        grid=(n_chunks,),
        in_specs=[
            pl.BlockSpec((B, 1), lambda c: (0, 0)),                # lengths
            pl.BlockSpec((time_chunk, B, 4 * H), lambda c: (c, 0, 0)),
            pl.BlockSpec((H, 4 * H), lambda c: (0, 0)),            # W_hh^T
            pl.BlockSpec((B, H), lambda c: (0, 0)),                # h0
            pl.BlockSpec((B, H), lambda c: (0, 0)),                # c0
        ],
        out_specs=[
            pl.BlockSpec((time_chunk, B, H), lambda c: (c, 0, 0)), # y chunk
            pl.BlockSpec((B, H), lambda c: (0, 0)),                # hn (resident)
            pl.BlockSpec((B, H), lambda c: (0, 0)),                # cn (resident)
        ],
        out_shape=(
            jax.ShapeDtypeStruct((T, B, H), jnp.float32),
            jax.ShapeDtypeStruct((B, H), jnp.float32),
            jax.ShapeDtypeStruct((B, H), jnp.float32),
        ),
        compiler_params=pltpu.CompilerParams(
            dimension_semantics=("arbitrary",)),
    )(lengths2, gates_x, w_hh_t,
      h0.astype(jnp.float32), c0.astype(jnp.float32))
    return y, hn, cn


# ----------------------------------------------------------------------------
# Full module forward (embedding -> packed multi-layer LSTM -> padded output)
# ----------------------------------------------------------------------------
def init_lstm_params(key, vocab_size, padding_idx, embedding_dim, hidden_size,
                     n_layers):
    params = {}
    key, ek = jax.random.split(key)
    emb = jax.random.normal(ek, (vocab_size, embedding_dim), jnp.float32)
    emb = emb.at[padding_idx].set(0.0)            # nn.Embedding padding_idx row
    params["embedding"] = emb

    k = 1.0 / math.sqrt(hidden_size)
    for l in range(n_layers):
        in_dim = embedding_dim if l == 0 else hidden_size
        key, k1, k2, k3, k4 = jax.random.split(key, 5)
        params[f"w_ih_{l}"] = jax.random.uniform(
            k1, (4 * hidden_size, in_dim), jnp.float32, -k, k)
        params[f"w_hh_{l}"] = jax.random.uniform(
            k2, (4 * hidden_size, hidden_size), jnp.float32, -k, k)
        params[f"b_ih_{l}"] = jax.random.uniform(
            k3, (4 * hidden_size,), jnp.float32, -k, k)
        params[f"b_hh_{l}"] = jax.random.uniform(
            k4, (4 * hidden_size,), jnp.float32, -k, k)
    return params


def lstm_forward(params, X_tokens, X_lengths, h0, c0, n_layers, *, time_chunk=8):
    """
    X_tokens : (B, T) int32 token ids
    X_lengths: python list of ints (sorted descending, like pack_padded_sequence)
    h0, c0   : (n_layers, B, H)
    returns  : (output (B, T_out, H), (h_n, c_n)) with T_out = max(X_lengths)
    """
    B, T = X_tokens.shape
    lengths = jnp.asarray(X_lengths, dtype=jnp.int32)

    # Embedding lookup (glue; gather is not the hot path).
    emb = jnp.take(params["embedding"], X_tokens, axis=0)        # (B, T, E)
    x = jnp.transpose(emb, (1, 0, 2))                            # (T, B, E)

    # Pad time to a multiple of the chunk size; padded steps are masked anyway.
    T_pad = ((T + time_chunk - 1) // time_chunk) * time_chunk
    if T_pad != T:
        x = jnp.pad(x, ((0, T_pad - T), (0, 0), (0, 0)))

    hn_list, cn_list = [], []
    for l in range(n_layers):
        x, hn, cn = lstm_layer(
            x, lengths,
            params[f"w_ih_{l}"], params[f"w_hh_{l}"],
            params[f"b_ih_{l}"], params[f"b_hh_{l}"],
            h0[l], c0[l], time_chunk=time_chunk)
        hn_list.append(hn)
        cn_list.append(cn)

    T_out = int(max(X_lengths))                                  # pad_packed len
    out = jnp.transpose(x, (1, 0, 2))[:, :T_out, :]              # (B, T_out, H)
    return out, (jnp.stack(hn_list, 0), jnp.stack(cn_list, 0))


# ----------------------------------------------------------------------------
# Pure-JAX reference (same math incl. bf16 matmul operands) for validation
# ----------------------------------------------------------------------------
def lstm_reference(params, X_tokens, X_lengths, h0, c0, n_layers):
    B, T = X_tokens.shape
    H = h0.shape[-1]
    lengths = jnp.asarray(X_lengths, jnp.int32)
    emb = jnp.take(params["embedding"], X_tokens, axis=0)
    x = jnp.transpose(emb, (1, 0, 2))                            # (T, B, E)
    hs, cs = [], []
    for l in range(n_layers):
        w_ih_t = jnp.transpose(params[f"w_ih_{l}"]).astype(jnp.bfloat16)
        w_hh_t = jnp.transpose(params[f"w_hh_{l}"]).astype(jnp.bfloat16)
        b = (params[f"b_ih_{l}"] + params[f"b_hh_{l}"]).astype(jnp.float32)
        h, c = h0[l], c0[l]
        ys = []
        for t in range(T):
            gx = jnp.dot(x[t].astype(jnp.bfloat16), w_ih_t,
                         preferred_element_type=jnp.float32) + b
            gates = gx + jnp.dot(h.astype(jnp.bfloat16), w_hh_t,
                                 preferred_element_type=jnp.float32)
            i_g = 0.5 * (jnp.tanh(0.5 * gates[:, 0 * H:1 * H]) + 1.0)
            f_g = 0.5 * (jnp.tanh(0.5 * gates[:, 1 * H:2 * H]) + 1.0)
            g_g = jnp.tanh(gates[:, 2 * H:3 * H])
            o_g = 0.5 * (jnp.tanh(0.5 * gates[:, 3 * H:4 * H]) + 1.0)
            c_new = f_g * c + i_g * g_g
            h_new = o_g * jnp.tanh(c_new)
            valid = (t < lengths)[:, None]
            h = jnp.where(valid, h_new, h)
            c = jnp.where(valid, c_new, c)
            ys.append(jnp.where(valid, h_new, 0.0))
        x = jnp.stack(ys, axis=0)
        hs.append(h)
        cs.append(c)
    T_out = int(max(X_lengths))
    out = jnp.transpose(x, (1, 0, 2))[:, :T_out, :]
    return out, (jnp.stack(hs, 0), jnp.stack(cs, 0))


if __name__ == "__main__":
    vocab_size = 32
    padding_idx = 0
    embedding_dim = 16
    hidden_size = 32
    n_layers = 2
    B, T = 2, 16
    X_lengths = [16, 11]                     # sorted descending (enforce_sorted)

    key = jax.random.PRNGKey(0)
    key, pk, xk, hk, ck = jax.random.split(key, 5)

    params = init_lstm_params(pk, vocab_size, padding_idx, embedding_dim,
                              hidden_size, n_layers)

    X = jax.random.randint(xk, (B, T), 1, vocab_size, dtype=jnp.int32)
    # zero-pad the tail of the shorter sequence with the padding token
    col = jnp.arange(T)[None, :]
    X = jnp.where(col < jnp.asarray(X_lengths)[:, None], X, padding_idx)

    h0 = jax.random.normal(hk, (n_layers, B, hidden_size), jnp.float32)
    c0 = jax.random.normal(ck, (n_layers, B, hidden_size), jnp.float32)

    out, (h_n, c_n) = lstm_forward(params, X, X_lengths, h0, c0, n_layers,
                                   time_chunk=8)
    jax.block_until_ready((out, h_n, c_n))

    assert out.shape == (B, max(X_lengths), hidden_size)
    assert h_n.shape == (n_layers, B, hidden_size)
    assert c_n.shape == (n_layers, B, hidden_size)
    # padded positions of the shorter sequence must be exactly zero
    assert float(jnp.abs(out[1, X_lengths[1]:, :]).max()) == 0.0

    # validate against the pure-JAX reference
    ref_out, (ref_hn, ref_cn) = lstm_reference(params, X, X_lengths, h0, c0,
                                               n_layers)
    assert float(jnp.max(jnp.abs(out - ref_out))) < 2e-2
    assert float(jnp.max(jnp.abs(h_n - ref_hn))) < 2e-2
    assert float(jnp.max(jnp.abs(c_n - ref_cn))) < 2e-2

    print("KERNEL_OK")
</pallas_src>

<mosaic_0001>
module attributes {stable_mosaic.version = 11 : i64} {
  func.func @_input_proj_kernel(%arg0: i32, %arg1: memref<16x16xbf16, #tpu.memory_space<vmem>>, %arg2: memref<16x128xbf16, #tpu.memory_space<vmem>>, %arg3: memref<1x128xf32, #tpu.memory_space<vmem>>, %arg4: memref<16x128xf32, #tpu.memory_space<vmem>>) attributes {dimension_semantics = [#tpu.dimension_semantics<parallel>], iteration_bounds = array<i64: 2>, scalar_prefetch = 0 : i64, scratch_operands = 0 : i64, tpu.core_type = #tpu.core_type<tc>, window_params = [{transform_indices = @transform_0, window_bounds = array<i64: 16, 16>}, {pipeline_mode = #tpu.pipeline_mode<synchronous>, transform_indices = @transform_1, window_bounds = array<i64: 16, 128>}, {pipeline_mode = #tpu.pipeline_mode<synchronous>, transform_indices = @transform_2, window_bounds = array<i64: 1, 128>}, {transform_indices = @transform_3, window_bounds = array<i64: 16, 128>}]} {
    %c0 = arith.constant 0 : index
    %c0_0 = arith.constant 0 : index
    %0 = vector.load %arg1[%c0, %c0_0] : memref<16x16xbf16, #tpu.memory_space<vmem>>, vector<16x16xbf16>
    %c0_1 = arith.constant 0 : index
    %c0_2 = arith.constant 0 : index
    %1 = vector.load %arg2[%c0_1, %c0_2] : memref<16x128xbf16, #tpu.memory_space<vmem>>, vector<16x128xbf16>
    %cst = arith.constant dense<0.000000e+00> : vector<16x128xf32>
    %2 = tpu.matmul %0, %1, %cst {dimension_numbers = #tpu.dot_dimension_numbers<[1], [0], [0], [1], [0, 0, 1, 1], [], []>} : vector<16x16xbf16>, vector<16x128xbf16>, vector<16x128xf32> -> vector<16x128xf32>
    %c0_3 = arith.constant 0 : index
    %c0_4 = arith.constant 0 : index
    %3 = vector.load %arg3[%c0_3, %c0_4] : memref<1x128xf32, #tpu.memory_space<vmem>>, vector<1x128xf32>
    %4 = vector.broadcast %3 : vector<1x128xf32> to vector<16x128xf32>
    %5 = arith.addf %2, %4 : vector<16x128xf32>
    %c0_5 = arith.constant 0 : index
    %c0_6 = arith.constant 0 : index
    %6 = vector.load %arg4[%c0_5, %c0_6] : memref<16x128xf32, #tpu.memory_space<vmem>>, vector<16x128xf32>
    tpu.vector_store %arg4[%c0_5, %c0_6], %5 {strides = array<i32>} : memref<16x128xf32, #tpu.memory_space<vmem>>, vector<16x128xf32>,
    return
  }
  func.func @transform_0(%arg0: i32) -> (i32, i32) {
    %c0_i32 = arith.constant 0 : i32
    %c0_i32_0 = arith.constant 0 : i32
    return %arg0, %c0_i32 : i32, i32
  }
  func.func @transform_1(%arg0: i32) -> (i32, i32) {
    %c0_i32 = arith.constant 0 : i32
    %c0_i32_0 = arith.constant 0 : i32
    %c0_i32_1 = arith.constant 0 : i32
    return %c0_i32, %c0_i32_0 : i32, i32
  }
  func.func @transform_2(%arg0: i32) -> (i32, i32) {
    %c0_i32 = arith.constant 0 : i32
    %c0_i32_0 = arith.constant 0 : i32
    %c0_i32_1 = arith.constant 0 : i32
    return %c0_i32, %c0_i32_0 : i32, i32
  }
  func.func @transform_3(%arg0: i32) -> (i32, i32) {
    %c0_i32 = arith.constant 0 : i32
    %c0_i32_0 = arith.constant 0 : i32
    return %arg0, %c0_i32 : i32, i32
  }
}

</mosaic_0001>

<bundles_post_ra>
// kernel: tpu_custom_call.1
= control target key start
LH: loop header
LB: loop body
LE: loop exit
PB: predicated region body
PF: predicated region fallthrough
CT: control target
= control target key end

     0   :  { %8 = vsyncpa [#allocation3], 0  ;;  %s585_s0 = inlined_call_operand.vmem [shape: bf16[32,16], index: 0, kind: input, shape index: {}]   ;;  %s586_s1 = inlined_call_operand.vmem [shape: bf16[16,128], index: 1, kind: input, shape index: {}]   ;;  %s587_s2 = inlined_call_operand.vmem [shape: f32[1,128], index: 2, kind: input, shape index: {}]   ;;  %s588_s3 = inlined_call_operand.hbm [shape: f32[32,128], index: 3, kind: output, shape index: {}]  }
   0x1   :  { %10 = vsyncpa [#allocation3 + $0x1], 0  ;;  %s477_s12 = smov 0   ;;  %s479_s13 = smov 0  }
   0x2   :  { %s481_s14 = smov 0   ;;  %s483_s15 = smov 0  }
   0x3 LB: > { %s498_s16 = sadd.s32 4294967295, %s450_s15   ;;  %s318_s17 = sadd.s32 4294967294, %s450_s15   ;;  %s450_s15 = sphi %s483_s15, %s594_s15   ;;  %s446_s14 = sphi %s481_s14, %s593_s14   ;;  %s442_s13 = sphi %s479_s13, %s592_s13   ;;  %s438_s12 = sphi %s477_s12, %s591_s12  }
   0x4   : > { %s502_s18 = sadd.s32 1, %s450_s15   ;;  %s91_s19 = sadd.s32 1, %s446_s14 }
   0x5   : > { %s88_s20 = ssub.s32 %s450_s15, %s502_s18  ;;  %p101_p0 = scmp.ne.s32.totalorder %s446_s14, %s442_s13 }
   0x6   : > { %p89_p1 = scmp.eq.s32.totalorder %s88_s20, 0  ;;  %p102_p2 = scmp.eq.s32.totalorder %s498_s16, 1 }
   0x7   : > { %p107_p3 = scmp.ne.s32.totalorder %s442_s13, %s438_s12  ;;  %p108_p4 = scmp.eq.s32.totalorder %s318_s17, 1 }
   0x8   : > { %s513_s21 = scalar_select %p89_p1, %s446_s14, %s91_s19  }
   0x9   : > { %p515_p5 = por %p102_p2, %p101_p0  ;;  %p519_p6 = por %p108_p4, %p107_p3 }
   0xa   : > { %p321_p7 = scmp.ge.s32.totalorder %s450_s15, 1  ;;  %p141_p8 = scmp.lt.s32.totalorder %s450_s15, 3 }
   0xc   : > { %p142_p9 = pnand %p321_p7, %p141_p8 }
   0xd   : > { %v386_v0 = vld [vmem:[%s586_s1] sm:$0xff] (!%p142_p9)   ;;  %v452_v1 = vmov (!%p142_p9), 0.0   ;;  %s323_s26 = sshll.u32 (!%p142_p9), %s498_s16, 1  ;;  %vm453_vm0 = vmmov (!%p142_p9), 0   ;;  %vm195_vm1 = vcmask (!%p142_p9), 130048   ;;  %s162_s4 = sand.u32 (!%p142_p9), 1, %s442_s13  }
   0xe   : > { %145 = sbr.rel (%p142_p9) target bundleno = 256 (0x100), region = 32  ;;  %337 = vmatprep.subr.bf16.mxu0 (!%p142_p9), %v452_v1  ;;  %339 = vmatprep.mubr.msk.bf16.mxu0 (!%p142_p9), %vm453_vm0, %v452_v1  ;;  %p166_p10 = scmp.lt.s32.totalorder (!%p142_p9), %s323_s26, 3  ;;  %v325_v3 = vld [vmem:[%s587_s2] ss:$0 sm:$0xff] (!%p142_p9) }
   0xf   : > { %338 = vmatpush3.bf16.msra.mxu0 (!%p142_p9), %v386_v0  ;;  %s322_s5 = sshll.u32 (!%p142_p9), %s162_s4, 4  ;;  %s334_s10 = sshll.u32 (!%p142_p9), %s498_s16, 8 }
  0x10   : > { %s164_s8 = scalar_lea.vmem (!%p142_p9), [#allocation2], %s322_s5  ;;  %s542_s19 = scalar_lea.hbm (!%p142_p9), %s588_s3, %s334_s10 }
  0x11   : > { %s256_s9 = sshll.u32 (!%p142_p9), %s164_s8, 4  ;;  %s544_s20 = scalar_lea.sflag (!%p142_p9), [#allocation3], %s162_s4  ;;  %s537_s9 = int_to_ptr.vmem [resolvable:$true] %s256_s9 }
  0x12   : > { %s388_s16 = scalar_lea.vmem (!%p142_p9), %s537_s9, 256  ;;  %s454_s24 = smov (!%p142_p9), [#allocation2]  }
  0x13   : > { %p389_p11 = scmp.ne.s32.totalorder (!%p142_p9), %s537_s9, %s388_s16  ;;  %s392_s25 = sshll.u32 (!%p142_p9), %s454_s24, 4  ;;  %s393_s25 = int_to_ptr.vmem [resolvable:$false] %s392_s25 }
  0x14   : > { %p395_p0 = scmp.lt.s32.totalorder (!%p142_p9), %s537_s9, %s393_s25 }
  0x15   : > { %s596_s26 = smov (!%p166_p10, %s323_s26), 3  ;;  %p390_p12 = pnand %p389_p11, %p515_p5 }
  0x16   : > { %s324_s27 = sshll.u32 %s596_s26, 2  ;;  %s394_s26 = scalar_lea.vmem %s393_s25, 512 }
  0x17   : > { %s169_s30 = scalar_lea.vmem %s585_s0, %s324_s27  ;;  %p391_p13 = pneg %p390_p12 }
  0x18   : > { %v387_v2 = vld [vmem:[%s169_s30] sm:$0xff]   ;;  %p396_p1 = scmp.lt.s32.totalorder %s394_s26, %s388_s16 }
  0x19   : > { %340 = vmatmul.mubr.msk.bf16.vlgmr.msra.gmra.mrb[0].mxu0 %vm195_vm1, %v387_v2 }
  0x1a   : > { %p397_p2 = por %p396_p1, %p395_p0 }
  0x1c   : > { %p398_p3 = pnand %p397_p2, %p391_p13 }
  0xec   : > { %v233_v4 = vpop.f32.mrb[0].mxu0 }
  0xed   : > { %v234_v5 = vadd.f32 %v325_v3, %v233_v4  ;;  %v341_v6 = vpop.f32.mrb[1].mxu0 }
  0xee   : > { %v236_v7 = vpop.f32.mrb[2].mxu0 }
  0xef   : > { %240 = vst [vmem:[%s164_s8] sm:$0xff] %v234_v5  ;;  %v237_v8 = vadd.f32 %v325_v3, %v236_v7  ;;  %v342_v9 = vpop.f32.mrb[3].mxu0 }
  0xf1   : > { %241 = vst [vmem:[%s164_s8 + $0x8] sm:$0xff] %v237_v8 }
  0xf2   : > { %401 = shalt.err (!%p398_p3)
}
  0xf3   : > { %s402_s27 = scalar_lea.hbm %s542_s19, 256  ;;  %s406_s30 = scalar_lea.hbm %s588_s3, 512 }
  0xf4   : > { %p403_p4 = scmp.ne.s32.totalorder %s542_s19, %s402_s27  ;;  %p407_p9 = scmp.lt.u32.totalorder %s542_s19, %s588_s3 }
  0xf5   : > { %p408_p10 = scmp.lt.u32.totalorder %s406_s30, %s402_s27  ;;  %p410_p12 = scmp.lt.u32.totalorder %s402_s27, %s542_s19 }
  0xf6   : > { %p404_p7 = pnand %p403_p4, %p515_p5 }
  0xf7   : > { %p409_p11 = por %p408_p10, %p407_p9 }
  0xf8   : > { %p405_p8 = pneg %p404_p7 }
  0xf9   : > { %p411_p13 = por %p410_p12, %p409_p11 }
  0xfb   : > { %p412_p0 = pnand %p411_p13, %p405_p8 }
  0xfd   : > { %415 = shalt.err (!%p412_p0)
}
  0xfe   : > { %s455_s6 = smov 128   ;;  %s456_s7 = smov 8  }
  0xff   : > { %343 = dma.vmem_to_hbm [thread:$0]  (%p515_p5), %s537_s9, 256, %s542_s19, %s544_s20, %s455_s6, %s455_s6, %s456_s7  }
 0x100 PF: > { %p349_p1 = scmp.ge.s32.totalorder %s450_s15, 2  ;;  %s271_s8 = sand.u32 1, %s438_s12  }
 0x101   : > { %s272_s10 = scalar_lea.sflag [#allocation3], %s271_s8 }
 0x102   : > { %p346_p2 = pnand %p349_p1, %p519_p6 }
 0x104   : > { %433 = dma.done.wait (!%p346_p2), %s272_s10, 256  }
 0x105   : > { %435 = vsyncadd (!%p346_p2), %s272_s10, 4294967040  ;;  %p13_p3 = scmp.ge.s32.totalorder %s502_s18, 4   ;;  %s591_s12 = smov %s442_s13 }
 0x106   : > { %s592_s13 = smov %s446_s14  ;;  %s593_s14 = smov %s513_s21 }
 0x107   : > { %s594_s15 = smov %s502_s18  ;;  %15 = sbr.rel (!%p13_p3) target bundleno = 3 (0x3), region = 67 }
 0x10e   :  { %277 = vsyncpa [#allocation3], 1 }
 0x10f   :  { %279 = vsyncpa [#allocation3 + $0x1], 1 }

</bundles_post_ra>
